<compile_context>
chip_gen: v5e
topology: v5e:2x2
jax: 0.10.0
libtpu: 0.0.40
codegen_flags: <defaults>
</compile_context>

<pallas_src>
import functools

import jax
import jax.numpy as jnp
from jax.experimental import pallas as pl
from jax.experimental.pallas import tpu as pltpu


# ----------------------------------------------------------------------------
# Per-generation tuning knobs.
# ----------------------------------------------------------------------------
def _tpu_generation():
    try:
        kind = jax.devices()[0].device_kind.lower()
    except Exception:
        return "unknown"
    if "v5" in kind and ("lite" in kind or "5e" in kind):
        return "v5e"
    if "v6" in kind:
        return "v6e"
    if "v7" in kind:
        return "v7x"
    return "unknown"


_GEN = _tpu_generation()

# Review: cap tm at 512-1024 rows, target >=4 grid steps (>=8 on v7x so each
# TensorCore still sees >=4 pipelined steps).
_TM_CAP = {"v7x": 1024, "v6e": 1024, "v5e": 512}.get(_GEN, 512)
_MIN_STEPS = 8 if _GEN == "v7x" else 4

# Review: <=~48 MiB on v7x (64 MiB physical VMEM), up to ~96 MiB on v6e,
# moderate on v5e. Clamp by the reported capacity when available.
_VMEM_LIMIT = {"v7x": 48, "v6e": 96, "v5e": 64}.get(_GEN, 32) * 1024 * 1024
try:
    _VMEM_LIMIT = min(_VMEM_LIMIT,
                      int(pltpu.get_tpu_info().vmem_capacity_bytes) * 3 // 4)
except Exception:
    pass

_COMPILER_PARAMS = pltpu.CompilerParams(
    dimension_semantics=("parallel",),
    vmem_limit_bytes=_VMEM_LIMIT,
)

# bf16 epilogue math is native on v6e/v7x VALU; keep f32 on v5e / unknown.
_BF16_EPILOGUE = _GEN in ("v6e", "v7x")
# v5e: store the tail output in bf16 (halves vst pressure + HBM writeback);
# the f32 up-cast fuses into the final NCHW transpose.
_TAIL_OUT_DTYPE = jnp.bfloat16 if _GEN == "v5e" else jnp.float32


def _pick_tm(m):
    """Row tile: as large as the cap allows while keeping >= _MIN_STEPS steps."""
    for t in (1024, 512, 256, 128, 64, 32, 16, 8):
        if t <= _TM_CAP and m % t == 0 and m // t >= _MIN_STEPS:
            return t
    for t in (512, 256, 128, 64, 32, 16, 8, 4, 2, 1):  # tiny-M fallback
        if t <= _TM_CAP and m % t == 0:
            return t
    return m


# ----------------------------------------------------------------------------
# Single-buffering of grid-invariant operands (pl.Buffered(1)), feature-probed
# once so the script still runs cleanly on runtimes that reject it.
# ----------------------------------------------------------------------------
def _probe_single_buffering():
    try:
        inv = pl.BlockSpec((8, 128), lambda i: (0, 0),
                           pipeline_mode=pl.Buffered(1))
    except Exception:
        return False
    try:
        def _copy(x_ref, o_ref):
            o_ref[...] = x_ref[...]
        fn = pl.pallas_call(
            _copy,
            out_shape=jax.ShapeDtypeStruct((16, 128), jnp.float32),
            grid=(2,),
            in_specs=[inv],
            out_specs=pl.BlockSpec((8, 128), lambda i: (i, 0)),
        )
        jax.block_until_ready(fn(jnp.zeros((8, 128), jnp.float32)))
        return True
    except Exception:
        return False


_USE_BUFFERED1 = _probe_single_buffering()


def _invariant_spec(shape):
    """BlockSpec for a grid-invariant operand; single-buffered when supported."""
    index_map = lambda i: (0,) * len(shape)
    if _USE_BUFFERED1:
        return pl.BlockSpec(shape, index_map, pipeline_mode=pl.Buffered(1))
    return pl.BlockSpec(shape, index_map)


# ----------------------------------------------------------------------------
# Pallas kernel A: row-tiled matmul (1x1 conv / im2col conv), optionally fused
# with a folded-BN affine (or just a bias) + ReLU. bf16 operands, f32 MXU
# accumulation, f32 epilogue.
# ----------------------------------------------------------------------------
def _mm_kernel(x_ref, w_ref, *rest, relu, has_scale, has_shift):
    acc = jnp.dot(x_ref[...], w_ref[...], preferred_element_type=jnp.float32)
    i = 0
    if has_scale:
        acc = acc * rest[i][...]
        i += 1
    if has_shift:
        acc = acc + rest[i][...]
        i += 1
    if relu:
        acc = jnp.maximum(acc, 0.0)
    o_ref = rest[i]
    o_ref[...] = acc.astype(o_ref.dtype)


def mm_fused(x, w, scale=None, shift=None, *, relu, out_dtype=jnp.float32):
    """(M,K)@(K,N) with optional per-channel scale/shift + ReLU.

    Activations are expected to already be bf16 (cast fused into the producer);
    weights are tiny and cast here.
    """
    M, K = x.shape
    N = w.shape[1]
    tm = _pick_tm(M)
    assert M % tm == 0, (M, tm)

    xb = x if x.dtype == jnp.bfloat16 else x.astype(jnp.bfloat16)
    wb = w.astype(jnp.bfloat16)

    in_specs = [
        pl.BlockSpec((tm, K), lambda i: (i, 0)),   # streamed row tile
        _invariant_spec((K, N)),                   # weights (single-buffered)
    ]
    args = [xb, wb]
    if scale is not None:
        in_specs.append(_invariant_spec((1, N)))
        args.append(jnp.reshape(scale.astype(jnp.float32), (1, N)))
    if shift is not None:
        in_specs.append(_invariant_spec((1, N)))
        args.append(jnp.reshape(shift.astype(jnp.float32), (1, N)))

    kernel = functools.partial(_mm_kernel, relu=relu,
                               has_scale=scale is not None,
                               has_shift=shift is not None)

    # TODO(synk): at the tiny test channel counts (N=4/18) output lanes are
    # sub-128 so stores are masked; at realistic channels (>=128) they are
    # lane-dense and this is moot.
    return pl.pallas_call(
        kernel,
        out_shape=jax.ShapeDtypeStruct((M, N), out_dtype),
        grid_spec=pltpu.PrefetchScalarGridSpec(
            num_scalar_prefetch=0,
            grid=(M // tm,),
            in_specs=in_specs,
            out_specs=pl.BlockSpec((tm, N), lambda i: (i, 0)),
        ),
        compiler_params=_COMPILER_PARAMS,
    )(*args)


# ----------------------------------------------------------------------------
# Pallas kernel B: fused tail
#   saliency scorer (1x1 conv -> BN -> ReLU -> 1x1 conv + bias) -> sigmoid
#   y = out2 * (1 + Scale * att_map)           [Scale module, factored form]
#   conv3 (1x1) + bn3 + identity residual + ReLU
# ----------------------------------------------------------------------------
def _tail_kernel(out2_ref, ident_ref, ws1_ref, s1s_ref, s1b_ref, ws2_row_ref,
                 w3_ref, bn3s_ref, bn3b_ref, ascale_ref, bs2_ref, o_ref,
                 *, bf16_gate):
    out2_bf = out2_ref[...]                                     # (TM, C) bf16

    # saliency scorer (bf16 matmul, f32 epilogue)
    h = jnp.dot(out2_bf, ws1_ref[...], preferred_element_type=jnp.float32)
    h = jnp.maximum(h * s1s_ref[...] + s1b_ref[...], 0.0)      # (TM, C//4)
    s = jnp.sum(h * ws2_row_ref[...], axis=-1, keepdims=True) + bs2_ref[0]
    att_map = jax.nn.sigmoid(s)                                 # (TM, 1)

    # Scale module fused: out2 + scale*(out2*att) == out2 * (1 + scale*att)
    gate = 1.0 + ascale_ref[0] * att_map                        # (TM, 1) f32
    if bf16_gate:
        y_bf = out2_bf * gate.astype(jnp.bfloat16)              # v6e/v7x
    else:
        y_bf = (out2_bf.astype(jnp.float32) * gate).astype(jnp.bfloat16)

    # conv3 + bn3 + identity + relu (identity streamed bf16, accumulated f32)
    z = jnp.dot(y_bf, w3_ref[...], preferred_element_type=jnp.float32)
    z = z * bn3s_ref[...] + bn3b_ref[...] + ident_ref[...].astype(jnp.float32)
    o_ref[...] = jnp.maximum(z, 0.0).astype(o_ref.dtype)


def attention_conv3_residual(out2, identity, ws1, s1s, s1b, ws2_row,
                             att_scale, bias_s2, w3, bn3s, bn3b, *, out_dtype):
    M, C = out2.shape
    C4 = ws1.shape[1]
    N = w3.shape[1]
    tm = _pick_tm(M)
    assert M % tm == 0

    return pl.pallas_call(
        functools.partial(_tail_kernel, bf16_gate=_BF16_EPILOGUE),
        out_shape=jax.ShapeDtypeStruct((M, N), out_dtype),
        grid_spec=pltpu.PrefetchScalarGridSpec(
            num_scalar_prefetch=0,
            grid=(M // tm,),
            in_specs=[
                pl.BlockSpec((tm, C), lambda i: (i, 0)),   # out2 (bf16)
                pl.BlockSpec((tm, N), lambda i: (i, 0)),   # identity (bf16)
                _invariant_spec((C, C4)),                  # ws1 (bf16)
                _invariant_spec((1, C4)),                  # saliency BN scale
                _invariant_spec((1, C4)),                  # saliency BN shift
                _invariant_spec((1, C4)),                  # ws2 row vector
                _invariant_spec((C, N)),                   # w3 (bf16)
                _invariant_spec((1, N)),                   # bn3 scale
                _invariant_spec((1, N)),                   # bn3 shift
                pl.BlockSpec(memory_space=pltpu.MemorySpace.SMEM),  # Scale
                pl.BlockSpec(memory_space=pltpu.MemorySpace.SMEM),  # ws2 bias
            ],
            out_specs=pl.BlockSpec((tm, N), lambda i: (i, 0)),
        ),
        compiler_params=_COMPILER_PARAMS,
    )(out2.astype(jnp.bfloat16),
      identity,                                   # already bf16 from producer
      ws1.astype(jnp.bfloat16),
      s1s.astype(jnp.float32), s1b.astype(jnp.float32),
      ws2_row.astype(jnp.float32),
      w3.astype(jnp.bfloat16),
      bn3s.astype(jnp.float32), bn3b.astype(jnp.float32),
      att_scale.astype(jnp.float32), bias_s2.astype(jnp.float32))


# ----------------------------------------------------------------------------
# Plain-JAX glue: im2col for the offset conv, bilinear deformable sampling.
# ----------------------------------------------------------------------------
def im2col(x, ksize, stride, pad):
    # TODO(synk): the 3x3 offset-conv patches are still materialized in plain
    # JAX (already bf16 since out1 is bf16, so the re-read is halved); a fully
    # in-kernel halo stencil (9 shifted BlockSpecs) is left out to keep Mosaic
    # lowering simple at these tiny channel counts.
    B, H, W, C = x.shape
    xp = jnp.pad(x, ((0, 0), (pad, pad), (pad, pad), (0, 0)))
    Ho = (H + 2 * pad - ksize) // stride + 1
    Wo = (W + 2 * pad - ksize) // stride + 1
    cols = []
    for ki in range(ksize):
        for kj in range(ksize):
            cols.append(xp[:, ki:ki + stride * Ho:stride,
                           kj:kj + stride * Wo:stride, :])
    return jnp.stack(cols, axis=3)


def _bilinear_sample(x, py, px):
    # x: (B, H, W, C) bf16; py, px: (B, Ho, Wo) f32. Returns bf16 so the cast
    # fuses into the gather (no standalone HBM cast pass for dpatch).
    B, H, W, C = x.shape
    y0 = jnp.floor(py)
    x0 = jnp.floor(px)
    y1 = y0 + 1.0
    x1 = x0 + 1.0
    wy1 = py - y0
    wy0 = 1.0 - wy1
    wx1 = px - x0
    wx0 = 1.0 - wx1

    bidx = jnp.arange(B)[:, None, None]

    def gather(yi, xi):
        valid = (yi >= 0) & (yi < H) & (xi >= 0) & (xi < W)
        yc = jnp.clip(yi, 0, H - 1).astype(jnp.int32)
        xc = jnp.clip(xi, 0, W - 1).astype(jnp.int32)
        v = x[bidx, yc, xc].astype(jnp.float32)       # (B, Ho, Wo, C)
        return jnp.where(valid[..., None], v, 0.0)

    out = ((wy0 * wx0)[..., None] * gather(y0, x0)
           + (wy0 * wx1)[..., None] * gather(y0, x1)
           + (wy1 * wx0)[..., None] * gather(y1, x0)
           + (wy1 * wx1)[..., None] * gather(y1, x1))
    return out.astype(jnp.bfloat16)


def deform_sample(x, offsets, ksize, stride, pad):
    # TODO(synk): the data-dependent bilinear gather of DeformConv2d stays in
    # plain JAX; Pallas TPU has no in-kernel dynamic-gather primitive for it.
    # (DCNv1 semantics, no modulation mask; offsets interleaved (dy, dx).)
    B, H, W, C = x.shape
    Ho, Wo = offsets.shape[1], offsets.shape[2]
    base_y = (jnp.arange(Ho) * stride - pad).astype(jnp.float32)
    base_x = (jnp.arange(Wo) * stride - pad).astype(jnp.float32)
    patches = []
    for ki in range(ksize):
        for kj in range(ksize):
            k = ki * ksize + kj
            dy = offsets[..., 2 * k]
            dx = offsets[..., 2 * k + 1]
            py = base_y[None, :, None] + float(ki) + dy
            px = base_x[None, None, :] + float(kj) + dx
            patches.append(_bilinear_sample(x, py, px))
    return jnp.stack(patches, axis=3)            # (B, Ho, Wo, k*k, C) bf16


# ----------------------------------------------------------------------------
# Parameters (deterministic, synthetic) and forward pass.
# ----------------------------------------------------------------------------
def _fold_bn(gamma, beta, mean, var, eps=1e-5):
    s = gamma / jnp.sqrt(var + eps)
    return s[None, :], (beta - mean * s)[None, :]


def init_params(key, in_channels, out_channels, ksize=3):
    keys = jax.random.split(key, 32)
    kit = iter(keys)

    def conv_w(shape, fan_in):
        return jax.random.normal(next(kit), shape, jnp.float32) / jnp.sqrt(
            jnp.float32(fan_in))

    def bn(c):
        gamma = 1.0 + 0.1 * jax.random.normal(next(kit), (c,), jnp.float32)
        beta = 0.1 * jax.random.normal(next(kit), (c,), jnp.float32)
        mean = 0.1 * jax.random.normal(next(kit), (c,), jnp.float32)
        var = 0.5 + jax.random.uniform(next(kit), (c,), jnp.float32)
        return _fold_bn(gamma, beta, mean, var)

    C = out_channels
    C4 = max(C // 4, 1)
    kk = ksize * ksize
    p = {}
    p["w1"] = conv_w((in_channels, C), in_channels)            # 1x1 conv1
    p["bn1_s"], p["bn1_b"] = bn(C)
    p["w_off"] = conv_w((kk * C, 2 * kk), kk * C)              # offset conv (3x3)
    p["b_off"] = jnp.zeros((2 * kk,), jnp.float32)             # zero-init bias
    p["w2"] = conv_w((kk * C, C), kk * C)                      # deform conv weight
    p["bn2_s"], p["bn2_b"] = bn(C)
    p["ws1"] = conv_w((C, C4), C)                              # saliency 1x1 a
    p["s1_s"], p["s1_b"] = bn(C4)
    p["ws2_row"] = conv_w((1, C4), C4)                         # saliency 1x1 b
    p["bs2"] = 0.1 * jax.random.normal(next(kit), (1,), jnp.float32)
    p["att_scale"] = jnp.zeros((1,), jnp.float32)              # Scale(init_value=0.0)
    p["w3"] = conv_w((C, 4 * C), C)                            # 1x1 conv3
    p["bn3_s"], p["bn3_b"] = bn(4 * C)
    return p


def attended_residual_block(x_nchw, p, *, ksize=3, stride=1):
    B, Cin, H, W = x_nchw.shape
    Cmid = p["w1"].shape[1]
    assert Cin == 4 * Cmid and stride == 1, "downsample=None path"
    pad = ksize // 2

    # NCHW -> NHWC with the bf16 cast fused into the transpose; this single
    # bf16 copy feeds both conv1 and the identity residual stream.
    x_bf = jnp.transpose(x_nchw, (0, 2, 3, 1)).astype(jnp.bfloat16)
    M = B * H * W

    # conv1 (1x1) + bn1 + relu                                  [Pallas, bf16 out]
    out1 = mm_fused(x_bf.reshape(M, Cin), p["w1"], p["bn1_s"], p["bn1_b"],
                    relu=True, out_dtype=jnp.bfloat16)
    out1_nhwc = out1.reshape(B, H, W, Cmid)

    # offset_conv (3x3) + bias (no BN)                          [im2col + Pallas]
    cols = im2col(out1_nhwc, ksize, stride, pad)
    Ho, Wo = cols.shape[1], cols.shape[2]
    Mo = B * Ho * Wo
    offsets = mm_fused(cols.reshape(Mo, ksize * ksize * Cmid), p["w_off"],
                       shift=p["b_off"], relu=False, out_dtype=jnp.float32)
    offsets = offsets.reshape(B, Ho, Wo, 2 * ksize * ksize)

    # deformable conv2 + bn2 + relu       [JAX bilinear gather (bf16) + Pallas]
    dpatch = deform_sample(out1_nhwc, offsets, ksize, stride, pad)
    out2 = mm_fused(dpatch.reshape(Mo, ksize * ksize * Cmid), p["w2"],
                    p["bn2_s"], p["bn2_b"], relu=True, out_dtype=jnp.bfloat16)

    # attention + Scale + conv3 + bn3 + identity + relu         [Pallas, fused]
    identity = x_bf.reshape(M, Cin)
    out = attention_conv3_residual(out2, identity, p["ws1"], p["s1_s"], p["s1_b"],
                                   p["ws2_row"], p["att_scale"], p["bs2"],
                                   p["w3"], p["bn3_s"], p["bn3_b"],
                                   out_dtype=_TAIL_OUT_DTYPE)

    # TODO(synk): final layout stays NCHW for PyTorch parity; if the consumer
    # accepted NHWC this transpose (one extra HBM round trip) could be dropped.
    out = out.reshape(B, Ho, Wo, 4 * Cmid).astype(jnp.float32)
    return jnp.transpose(out, (0, 3, 1, 2))


if __name__ == "__main__":
    key = jax.random.PRNGKey(0)
    kx, kp = jax.random.split(key)

    B, Cin, H, W = 2, 16, 16, 16          # in_channels = out_channels * expansion
    out_channels = 4

    x = jax.random.normal(kx, (B, Cin, H, W), jnp.float32)
    params = init_params(kp, Cin, out_channels)
    # Scale's parameter initializes to 0.0 (faithful to the module); use a
    # nonzero learned value here so the fused attention/Scale path is exercised.
    params["att_scale"] = jnp.full((1,), 0.25, jnp.float32)

    y = attended_residual_block(x, params)
    jax.block_until_ready(y)
    assert y.shape == (B, out_channels * 4, H, W), y.shape
    assert bool(jnp.all(jnp.isfinite(y)))
    print("KERNEL_OK")
</pallas_src>

<mosaic_0001>
module attributes {stable_mosaic.version = 11 : i64} {
  func.func @_copy(%arg0: i32, %arg1: memref<8x128xf32, #tpu.memory_space<vmem>>, %arg2: memref<8x128xf32, #tpu.memory_space<vmem>>) attributes {dimension_semantics = [#tpu.dimension_semantics<arbitrary>], iteration_bounds = array<i64: 2>, scalar_prefetch = 0 : i64, scratch_operands = 0 : i64, tpu.core_type = #tpu.core_type<tc>, window_params = [{pipeline_mode = #tpu.pipeline_mode<synchronous>, transform_indices = @transform_0, window_bounds = array<i64: 8, 128>}, {transform_indices = @transform_1, window_bounds = array<i64: 8, 128>}]} {
    %c0 = arith.constant 0 : index
    %c0_0 = arith.constant 0 : index
    %0 = vector.load %arg1[%c0, %c0_0] : memref<8x128xf32, #tpu.memory_space<vmem>>, vector<8x128xf32>
    %c0_1 = arith.constant 0 : index
    %c0_2 = arith.constant 0 : index
    %1 = vector.load %arg2[%c0_1, %c0_2] : memref<8x128xf32, #tpu.memory_space<vmem>>, vector<8x128xf32>
    tpu.vector_store %arg2[%c0_1, %c0_2], %0 {strides = array<i32>} : memref<8x128xf32, #tpu.memory_space<vmem>>, vector<8x128xf32>,
    return
  }
  func.func @transform_0(%arg0: i32) -> (i32, i32) {
    %c0_i32 = arith.constant 0 : i32
    %c0_i32_0 = arith.constant 0 : i32
    %c0_i32_1 = arith.constant 0 : i32
    return %c0_i32, %c0_i32_0 : i32, i32
  }
  func.func @transform_1(%arg0: i32) -> (i32, i32) {
    %c0_i32 = arith.constant 0 : i32
    %c0_i32_0 = arith.constant 0 : i32
    return %arg0, %c0_i32 : i32, i32
  }
}

module attributes {stable_mosaic.version = 11 : i64} {
  func.func @_mm_kernel(%arg0: i32, %arg1: memref<128x16xbf16, #tpu.memory_space<vmem>>, %arg2: memref<16x4xbf16, #tpu.memory_space<vmem>>, %arg3: memref<1x4xf32, #tpu.memory_space<vmem>>, %arg4: memref<1x4xf32, #tpu.memory_space<vmem>>, %arg5: memref<128x4xbf16, #tpu.memory_space<vmem>>) attributes {dimension_semantics = [#tpu.dimension_semantics<parallel>], iteration_bounds = array<i64: 4>, scalar_prefetch = 0 : i64, scratch_operands = 0 : i64, tpu.core_type = #tpu.core_type<tc>, window_params = [{transform_indices = @transform_0, window_bounds = array<i64: 128, 16>}, {pipeline_mode = #tpu.pipeline_mode<synchronous>, transform_indices = @transform_1, window_bounds = array<i64: 16, 4>}, {pipeline_mode = #tpu.pipeline_mode<synchronous>, transform_indices = @transform_2, window_bounds = array<i64: 1, 4>}, {pipeline_mode = #tpu.pipeline_mode<synchronous>, transform_indices = @transform_3, window_bounds = array<i64: 1, 4>}, {transform_indices = @transform_4, window_bounds = array<i64: 128, 4>}]} {
    %c0 = arith.constant 0 : index
    %c0_0 = arith.constant 0 : index
    %0 = vector.load %arg1[%c0, %c0_0] : memref<128x16xbf16, #tpu.memory_space<vmem>>, vector<128x16xbf16>
    %c0_1 = arith.constant 0 : index
    %c0_2 = arith.constant 0 : index
    %1 = vector.load %arg2[%c0_1, %c0_2] : memref<16x4xbf16, #tpu.memory_space<vmem>>, vector<16x4xbf16>
    %cst = arith.constant dense<0.000000e+00> : vector<128x4xf32>
    %2 = tpu.matmul %0, %1, %cst {dimension_numbers = #tpu.dot_dimension_numbers<[1], [0], [0], [1], [0, 0, 1, 1], [], []>} : vector<128x16xbf16>, vector<16x4xbf16>, vector<128x4xf32> -> vector<128x4xf32>
    %c0_3 = arith.constant 0 : index
    %c0_4 = arith.constant 0 : index
    %3 = vector.load %arg3[%c0_3, %c0_4] : memref<1x4xf32, #tpu.memory_space<vmem>>, vector<1x4xf32>
    %4 = vector.broadcast %3 : vector<1x4xf32> to vector<128x4xf32>
    %5 = arith.mulf %2, %4 : vector<128x4xf32>
    %c0_5 = arith.constant 0 : index
    %c0_6 = arith.constant 0 : index
    %6 = vector.load %arg4[%c0_5, %c0_6] : memref<1x4xf32, #tpu.memory_space<vmem>>, vector<1x4xf32>
    %7 = vector.broadcast %6 : vector<1x4xf32> to vector<128x4xf32>
    %8 = arith.addf %5, %7 : vector<128x4xf32>
    %cst_7 = arith.constant 0.000000e+00 : f32
    %9 = vector.broadcast %cst_7 : f32 to vector<128x4xf32>
    %10 = arith.maximumf %8, %9 : vector<128x4xf32>
    %11 = arith.truncf %10 : vector<128x4xf32> to vector<128x4xbf16>
    %c0_8 = arith.constant 0 : index
    %c0_9 = arith.constant 0 : index
    %12 = vector.load %arg5[%c0_8, %c0_9] : memref<128x4xbf16, #tpu.memory_space<vmem>>, vector<128x4xbf16>
    tpu.vector_store %arg5[%c0_8, %c0_9], %11 {strides = array<i32>} : memref<128x4xbf16, #tpu.memory_space<vmem>>, vector<128x4xbf16>,
    return
  }
  func.func @transform_0(%arg0: i32) -> (i32, i32) {
    %c0_i32 = arith.constant 0 : i32
    %c0_i32_0 = arith.constant 0 : i32
    return %arg0, %c0_i32 : i32, i32
  }
  func.func @transform_1(%arg0: i32) -> (i32, i32) {
    %c0_i32 = arith.constant 0 : i32
    %c0_i32_0 = arith.constant 0 : i32
    %c0_i32_1 = arith.constant 0 : i32
    return %c0_i32, %c0_i32_0 : i32, i32
  }
  func.func @transform_2(%arg0: i32) -> (i32, i32) {
    %c0_i32 = arith.constant 0 : i32
    %c0_i32_0 = arith.constant 0 : i32
    %c0_i32_1 = arith.constant 0 : i32
    return %c0_i32, %c0_i32_0 : i32, i32
  }
  func.func @transform_3(%arg0: i32) -> (i32, i32) {
    %c0_i32 = arith.constant 0 : i32
    %c0_i32_0 = arith.constant 0 : i32
    %c0_i32_1 = arith.constant 0 : i32
    return %c0_i32, %c0_i32_0 : i32, i32
  }
  func.func @transform_4(%arg0: i32) -> (i32, i32) {
    %c0_i32 = arith.constant 0 : i32
    %c0_i32_0 = arith.constant 0 : i32
    return %arg0, %c0_i32 : i32, i32
  }
}

</mosaic_0001>

<bundles_post_ra>
// kernel: tpu_custom_call.1
= control target key start
LH: loop header
LB: loop body
LE: loop exit
PB: predicated region body
PF: predicated region fallthrough
CT: control target
= control target key end

     0   :  { %6 = vsyncpa [#allocation3], 0  ;;  %s440_s0 = inlined_call_operand.hbm [shape: f32[8,128], index: 0, kind: input, shape index: {}]   ;;  %s441_s1 = inlined_call_operand.hbm [shape: f32[16,128], index: 1, kind: output, shape index: {}]  }
   0x1   :  { %7 = vsyncpa [#allocation4], 0 }
   0x2   :  { %9 = vsyncpa [#allocation4 + $0x1], 0  ;;  %s356_s6 = smov 0   ;;  %s358_s7 = smov 0  }
   0x3   :  { %s360_s8 = smov 0   ;;  %s362_s9 = smov 0  }
   0x4 LB: > { %s377_s10 = sadd.s32 4294967295, %s343_s9   ;;  %s187_s11 = sadd.s32 4294967294, %s343_s9   ;;  %s343_s9 = sphi %s362_s9, %s447_s9   ;;  %s339_s8 = sphi %s360_s8, %s446_s8   ;;  %s335_s7 = sphi %s358_s7, %s445_s7   ;;  %s331_s6 = sphi %s356_s6, %s444_s6  }
   0x5   : > { %s381_s12 = sadd.s32 1, %s343_s9   ;;  %s43_s13 = sadd.s32 1, %s339_s8 }
   0x6   : > { %s40_s14 = ssub.s32 %s343_s9, %s381_s12  ;;  %p53_p0 = scmp.ne.s32.totalorder %s339_s8, %s335_s7 }
   0x7   : > { %p41_p1 = scmp.eq.s32.totalorder %s40_s14, 0  ;;  %p54_p2 = scmp.eq.s32.totalorder %s377_s10, 1 }
   0x8   : > { %p59_p3 = scmp.ne.s32.totalorder %s335_s7, %s331_s6  ;;  %p60_p4 = scmp.eq.s32.totalorder %s187_s11, 1 }
   0x9   : > { %s392_s15 = scalar_select %p41_p1, %s339_s8, %s43_s13  }
   0xa   : > { %p394_p5 = por %p54_p2, %p53_p0  ;;  %p398_p6 = por %p60_p4, %p59_p3 }
   0xb   : > { %p188_p7 = scmp.ge.s32.totalorder %s343_s9, 1  ;;  %p67_p8 = scmp.lt.s32.totalorder %s343_s9, 3 }
   0xc   : > { %p211_p9 = scmp.eq.s32.totalorder %s377_s10, 0  ;;  %s79_s20 = sshll.u32 %s440_s0, 4  ;;  %s80_s20 = int_to_ptr.hbm [resolvable:$true] %s79_s20 }
   0xd   : > { %p68_p10 = pnand %p188_p7, %p67_p8  ;;  %s345_s21 = smov [#allocation2]  }
   0xe   : > { %s81_s22 = sshll.u32 %s345_s21, 4  ;;  %s82_s22 = int_to_ptr.vmem [resolvable:$true] %s81_s22 }
   0xf   : > { %p203_p11 = pneg %p68_p10  ;;  %94 = sbr.rel (%p68_p10) target bundleno = 37 (0x25), region = 24 }
  0x11   : > { %p204_p12 = pnand %p211_p9, %p203_p11 }
  0x13   : > { %206 = dma.hbm_to_vmem [thread:$0]  (!%p204_p12), %s80_s20, 128, %s82_s22, [#allocation3]  }
  0x14   : > { %322 = dma.done.wait (%p211_p9), [#allocation3], 128  }
  0x15   : > { %324 = vsyncadd (%p211_p9), [#allocation3], 4294967168  ;;  %s107_s23 = sand.u32 1, %s335_s7   ;;  %s194_s24 = sshll.u32 %s377_s10, 3  ;;  %v110_v0 = vld [vmem:[#allocation2] sm:$0xff] }
  0x16   : > { %s192_s25 = sshll.u32 %s107_s23, 3  ;;  %s123_s28 = scalar_lea.hbm %s441_s1, %s194_s24 }
  0x17   : > { %s109_s29 = scalar_lea.vmem [#allocation5], %s192_s25  ;;  %s127_s2 = sshll.u32 %s123_s28, 4  ;;  %s128_s2 = int_to_ptr.hbm [resolvable:$true] %s127_s2 }
  0x18   : > { %s125_s30 = sshll.u32 %s109_s29, 4  ;;  %111 = vst [vmem:[%s109_s29] sm:$0xff] %v110_v0  ;;  %s113_s3 = scalar_lea.sflag [#allocation4], %s107_s23  ;;  %s126_s30 = int_to_ptr.vmem [resolvable:$true] %s125_s30 }
  0x19   : > { %s291_s4 = sshra.s32 %s128_s2, 4  ;;  %s297_s13 = scalar_lea.hbm %s441_s1, 16  ;;  %s292_s4 = int_to_ptr.hbm [resolvable:$true] %s291_s4 }
  0x1a   : > { %s293_s5 = scalar_lea.hbm %s292_s4, 8  ;;  %p298_p2 = scmp.lt.s32.totalorder %s292_s4, %s441_s1 }
  0x1b   : > { %p294_p13 = scmp.ne.s32.totalorder %s292_s4, %s293_s5  ;;  %p299_p3 = scmp.lt.s32.totalorder %s297_s13, %s293_s5 }
  0x1d   : > { %p295_p0 = pnand %p294_p13, %p394_p5  ;;  %p300_p4 = por %p299_p3, %p298_p2 }
  0x1f   : > { %p296_p1 = pneg %p295_p0 }
  0x21   : > { %p301_p7 = pnand %p300_p4, %p296_p1 }
  0x23   : > { %304 = shalt.err (!%p301_p7)
}
  0x24   : > { %201 = dma.vmem_to_hbm [thread:$0]  (%p394_p5), %s126_s30, 128, %s128_s2, %s113_s3  }
  0x25 PF: > { %p213_p8 = scmp.ge.s32.totalorder %s343_s9, 2  ;;  %s139_s19 = sand.u32 1, %s331_s6  }
  0x26   : > { %s140_s20 = scalar_lea.sflag [#allocation4], %s139_s19 }
  0x27   : > { %p208_p9 = pnand %p213_p8, %p398_p6 }
  0x29   : > { %p209_p10 = pneg %p208_p9 }
  0x2b   : > { %326 = dma.done.wait (%p209_p10), %s140_s20, 128  }
  0x2c   : > { %328 = vsyncadd (%p209_p10), %s140_s20, 4294967168  ;;  %p12_p11 = scmp.ge.s32.totalorder %s381_s12, 4   ;;  %s444_s6 = smov %s335_s7 }
  0x2d   : > { %s445_s7 = smov %s339_s8  ;;  %s446_s8 = smov %s392_s15 }
  0x2e   : > { %s447_s9 = smov %s381_s12  ;;  %14 = sbr.rel (!%p12_p11) target bundleno = 4 (0x4), region = 61 }
  0x33   :  { %146 = vsyncpa [#allocation3], 1 }
  0x34   :  { %148 = vsyncpa [#allocation3 + $0x1], 1 }
  0x35   :  { %149 = vsyncpa [#allocation4], 1 }
  0x36   :  { %151 = vsyncpa [#allocation4 + $0x1], 1 }

// kernel: tpu_custom_call.1
= control target key start
LH: loop header
LB: loop body
LE: loop exit
PB: predicated region body
PF: predicated region fallthrough
CT: control target
= control target key end

     0   :  { %s595_s15 = smov 0   ;;  %s706_s0 = inlined_call_operand.vmem [shape: bf16[512,16], index: 0, kind: input, shape index: {}]   ;;  %s707_s1 = inlined_call_operand.vmem [shape: bf16[16,4], index: 1, kind: input, shape index: {}]   ;;  %s708_s2 = inlined_call_operand.vmem [shape: f32[1,4], index: 2, kind: input, shape index: {}]   ;;  %s709_s3 = inlined_call_operand.vmem [shape: f32[1,4], index: 3, kind: input, shape index: {}]   ;;  %s710_s4 = inlined_call_operand.vmem [shape: bf16[512,4], index: 4, kind: output, shape index: {}]  }
   0x1 LB: > { %s485_s16 = sadd.s32 4294967295, %s568_s15   ;;  %p489_p0 = scmp.ge.s32.totalorder %s568_s15, 1  ;;  %s568_s15 = sphi %s595_s15, %s14_s15  }
   0x2   : > { %p163_p1 = scmp.lt.s32.totalorder %s568_s15, 5 }
   0x4   : > { %p164_p2 = pnand %p489_p0, %p163_p1 }
   0x5   : > { %s490_s19 = sshll.u32 (!%p164_p2), %s485_s16, 4 }
   0x6   : > { %167 = sbr.rel (%p164_p2) target bundleno = 182 (0xb6), region = 36  ;;  %p190_p3 = scmp.lt.s32.totalorder (!%p164_p2), %s490_s19, 63 }
   0xb   : > { %v548_v0 = vld [vmem:[%s707_s1] sm:$0xff]  ;;  %s712_s19 = smov (!%p190_p3, %s490_s19), 63  ;;  %vm266_vm0 = vcmask 130048   ;;  %vm412_vm1 = vcmask 27648  }
   0xc   : > { %298 = vmatpush.bf16.msra.mxu0 %v548_v0  ;;  %549 = vmatpush.bf16.msra.mxu1 %v548_v0  ;;  %s491_s20 = sshll.u32 %s712_s19, 2  ;;  %v625_v9 = vld [vmem:[%s708_s2] ss:$0 sm:$0xff] }
   0xd   : > { %550 = vmatpush.bf16.msra.mxu2 %v548_v0  ;;  %551 = vmatpush.bf16.msra.mxu3 %v548_v0  ;;  %s193_s23 = scalar_lea.vmem %s706_s0, %s491_s20  ;;  %v630_v10 = vld [vmem:[%s709_s3] ss:$0 sm:$0xff]  ;;  %s641_s30 = scalar_lea.vmem %s710_s4, %s491_s20 }
   0xe   : > { %v540_v1 = vld [vmem:[%s193_s23] sm:$0xff]  ;;  %v542_v2 = vld [vmem:[%s193_s23 + $0x10] sm:$0xff]  ;;  %v541_v5 = vld [vmem:[%s193_s23 + $0x8] sm:$0xff] }
   0xf   : > { %v544_v3 = vld [vmem:[%s193_s23 + $0x20] sm:$0xff]  ;;  %v546_v4 = vld [vmem:[%s193_s23 + $0x30] sm:$0xff]  ;;  %530 = vmatmul.msk.bf16.vlgmr.msra.gmra.mxu0 %vm266_vm0, %v540_v1  ;;  %532 = vmatmul.msk.bf16.vlgmr.msra.gmra.mxu1 %vm266_vm0, %v542_v2  ;;  %v543_v6 = vld [vmem:[%s193_s23 + $0x18] sm:$0xff] }
  0x10   : > { %534 = vmatmul.msk.bf16.vlgmr.msra.gmra.mxu2 %vm266_vm0, %v544_v3  ;;  %536 = vmatmul.msk.bf16.vlgmr.msra.gmra.mxu3 %vm266_vm0, %v546_v4  ;;  %v545_v7 = vld [vmem:[%s193_s23 + $0x28] sm:$0xff]  ;;  %v547_v8 = vld [vmem:[%s193_s23 + $0x38] sm:$0xff] }
  0x1f   : > { %531 = vmatmul.msk.bf16.gmra.mxu0 %vm266_vm0, %v541_v5  ;;  %533 = vmatmul.msk.bf16.gmra.mxu1 %vm266_vm0, %v543_v6 }
  0x20   : > { %535 = vmatmul.msk.bf16.gmra.mxu2 %vm266_vm0, %v545_v7  ;;  %537 = vmatmul.msk.bf16.gmra.mxu3 %vm266_vm0, %v547_v8 }
  0x8c   : > { %v300_v11 = vpop.f32.mrf.mxu0  ;;  %v310_v12 = vpop.f32.mrf.mxu1 }
  0x8d   : > { %v344_v13 = vmul.f32 %v625_v9, %v300_v11  ;;  %v348_v14 = vmul.f32 %v625_v9, %v310_v12 }
  0x8f   : > { %v364_v15 = vadd.f32 %v630_v10, %v344_v13  ;;  %v368_v16 = vadd.f32 %v630_v10, %v348_v14 }
  0x91   : > { %v380_v17 = vmax.f32 %v364_v15, 0.0  ;;  %v384_v18 = vmax.f32 %v368_v16, 0.0 }
  0x93   : > { %v396_v19 = vpack.c.bf16 %v380_v17, %v380_v17  ;;  %v400_v20 = vpack.c.bf16 %v384_v18, %v384_v18  ;;  %v320_v21 = vpop.f32.mrf.mxu2  ;;  %v330_v22 = vpop.f32.mrf.mxu3 }
  0x94   : > { %v352_v23 = vmul.f32 %v625_v9, %v320_v21  ;;  %v356_v24 = vmul.f32 %v625_v9, %v330_v22  ;;  %v302_v25 = vpop.f32.mrf.mxu0  ;;  %v312_v26 = vpop.f32.mrf.mxu1 }
  0x95   : > { %413 = vst.msk [vmem:[%s641_s30] sm:$0xf] %vm412_vm1, %v396_v19  ;;  %v345_v27 = vmul.f32 %v625_v9, %v302_v25  ;;  %v349_v28 = vmul.f32 %v625_v9, %v312_v26 }
  0x96   : > { %417 = vst.msk [vmem:[%s641_s30 + $0x10] sm:$0xf] %vm412_vm1, %v400_v20  ;;  %v372_v29 = vadd.f32 %v630_v10, %v352_v23  ;;  %v376_v30 = vadd.f32 %v630_v10, %v356_v24 }
  0x97   : > { %v365_v31 = vadd.f32 %v630_v10, %v345_v27  ;;  %v369_v32 = vadd.f32 %v630_v10, %v349_v28 }
  0x98   : > { %v388_v33 = vmax.f32 %v372_v29, 0.0  ;;  %v392_v34 = vmax.f32 %v376_v30, 0.0 }
  0x99   : > { %v381_v35 = vmax.f32 %v365_v31, 0.0  ;;  %v385_v36 = vmax.f32 %v369_v32, 0.0 }
  0x9a   : > { %v404_v37 = vpack.c.bf16 %v388_v33, %v388_v33  ;;  %v408_v38 = vpack.c.bf16 %v392_v34, %v392_v34 }
  0x9b   : > { %v397_v39 = vpack.c.bf16 %v381_v35, %v381_v35  ;;  %v401_v40 = vpack.c.bf16 %v385_v36, %v385_v36  ;;  %v322_v41 = vpop.f32.mrf.mxu2  ;;  %v332_v42 = vpop.f32.mrf.mxu3 }
  0x9c   : > { %421 = vst.msk [vmem:[%s641_s30 + $0x20] sm:$0xf] %vm412_vm1, %v404_v37  ;;  %v353_v43 = vmul.f32 %v625_v9, %v322_v41  ;;  %v357_v44 = vmul.f32 %v625_v9, %v332_v42  ;;  %v305_v45 = vpop.f32.mrf.mxu0  ;;  %v315_v46 = vpop.f32.mrf.mxu1 }
  0x9d   : > { %425 = vst.msk [vmem:[%s641_s30 + $0x30] sm:$0xf] %vm412_vm1, %v408_v38  ;;  %v346_v47 = vmul.f32 %v625_v9, %v305_v45  ;;  %v350_v48 = vmul.f32 %v625_v9, %v315_v46 }
  0x9e   : > { %414 = vst.msk [vmem:[%s641_s30 + $0x4] sm:$0xf] %vm412_vm1, %v397_v39  ;;  %v373_v49 = vadd.f32 %v630_v10, %v353_v43  ;;  %v377_v50 = vadd.f32 %v630_v10, %v357_v44 }
  0x9f   : > { %418 = vst.msk [vmem:[%s641_s30 + $0x14] sm:$0xf] %vm412_vm1, %v401_v40  ;;  %v366_v51 = vadd.f32 %v630_v10, %v346_v47  ;;  %v370_v52 = vadd.f32 %v630_v10, %v350_v48 }
  0xa0   : > { %v389_v53 = vmax.f32 %v373_v49, 0.0  ;;  %v393_v54 = vmax.f32 %v377_v50, 0.0 }
  0xa1   : > { %v382_v55 = vmax.f32 %v366_v51, 0.0  ;;  %v386_v56 = vmax.f32 %v370_v52, 0.0 }
  0xa2   : > { %v405_v57 = vpack.c.bf16 %v389_v53, %v389_v53  ;;  %v409_v58 = vpack.c.bf16 %v393_v54, %v393_v54 }
  0xa3   : > { %v398_v59 = vpack.c.bf16 %v382_v55, %v382_v55  ;;  %v402_v60 = vpack.c.bf16 %v386_v56, %v386_v56  ;;  %v325_v61 = vpop.f32.mrf.mxu2  ;;  %v335_v62 = vpop.f32.mrf.mxu3 }
  0xa4   : > { %422 = vst.msk [vmem:[%s641_s30 + $0x24] sm:$0xf] %vm412_vm1, %v405_v57  ;;  %v354_v63 = vmul.f32 %v625_v9, %v325_v61  ;;  %v358_v0 = vmul.f32 %v625_v9, %v335_v62  ;;  %v307_v1 = vpop.f32.mrf.mxu0  ;;  %v317_v2 = vpop.f32.mrf.mxu1 }
  0xa5   : > { %426 = vst.msk [vmem:[%s641_s30 + $0x34] sm:$0xf] %vm412_vm1, %v409_v58  ;;  %v347_v3 = vmul.f32 %v625_v9, %v307_v1  ;;  %v351_v4 = vmul.f32 %v625_v9, %v317_v2 }
  0xa6   : > { %415 = vst.msk [vmem:[%s641_s30 + $0x8] sm:$0xf] %vm412_vm1, %v398_v59  ;;  %v374_v5 = vadd.f32 %v630_v10, %v354_v63  ;;  %v378_v6 = vadd.f32 %v630_v10, %v358_v0 }
  0xa7   : > { %419 = vst.msk [vmem:[%s641_s30 + $0x18] sm:$0xf] %vm412_vm1, %v402_v60  ;;  %v367_v7 = vadd.f32 %v630_v10, %v347_v3  ;;  %v371_v8 = vadd.f32 %v630_v10, %v351_v4 }
  0xa8   : > { %v390_v11 = vmax.f32 %v374_v5, 0.0  ;;  %v394_v12 = vmax.f32 %v378_v6, 0.0 }
  0xa9   : > { %v383_v13 = vmax.f32 %v367_v7, 0.0  ;;  %v387_v14 = vmax.f32 %v371_v8, 0.0 }
  0xaa   : > { %v406_v15 = vpack.c.bf16 %v390_v11, %v390_v11  ;;  %v410_v16 = vpack.c.bf16 %v394_v12, %v394_v12 }
  0xab   : > { %v399_v17 = vpack.c.bf16 %v383_v13, %v383_v13  ;;  %v403_v18 = vpack.c.bf16 %v387_v14, %v387_v14  ;;  %v327_v19 = vpop.f32.mrf.mxu2  ;;  %v337_v20 = vpop.f32.mrf.mxu3 }
  0xac   : > { %423 = vst.msk [vmem:[%s641_s30 + $0x28] sm:$0xf] %vm412_vm1, %v406_v15  ;;  %v355_v21 = vmul.f32 %v625_v9, %v327_v19  ;;  %v359_v22 = vmul.f32 %v625_v9, %v337_v20 }
  0xad   : > { %427 = vst.msk [vmem:[%s641_s30 + $0x38] sm:$0xf] %vm412_vm1, %v410_v16 }
  0xae   : > { %416 = vst.msk [vmem:[%s641_s30 + $0xc] sm:$0xf] %vm412_vm1, %v399_v17  ;;  %v375_v23 = vadd.f32 %v630_v10, %v355_v21  ;;  %v379_v24 = vadd.f32 %v630_v10, %v359_v22 }
  0xaf   : > { %420 = vst.msk [vmem:[%s641_s30 + $0x1c] sm:$0xf] %vm412_vm1, %v403_v18 }
  0xb0   : > { %v391_v25 = vmax.f32 %v375_v23, 0.0  ;;  %v395_v26 = vmax.f32 %v379_v24, 0.0 }
  0xb2   : > { %v407_v27 = vpack.c.bf16 %v391_v25, %v391_v25  ;;  %v411_v28 = vpack.c.bf16 %v395_v26, %v395_v26 }
  0xb4   : > { %424 = vst.msk [vmem:[%s641_s30 + $0x2c] sm:$0xf] %vm412_vm1, %v407_v27 }
  0xb5   : > { %428 = vst.msk [vmem:[%s641_s30 + $0x3c] sm:$0xf] %vm412_vm1, %v411_v28 }
  0xb6 PF: > { %s14_s15 = sadd.s32 1, %s568_s15  }
  0xb7   : > { %p11_p4 = scmp.ge.s32.totalorder %s14_s15, 6  }
  0xb9   :  { %13 = sbr.rel (!%p11_p4) target bundleno = 1 (0x1), region = 66 }

</bundles_post_ra>
